<compile_context>
chip_gen: v7x
topology: tpu7x:2x2x1
jax: 0.10.0
libtpu: 0.0.40
codegen_flags: <defaults>
</compile_context>

<pallas_src>
import functools

import jax
import jax.numpy as jnp
from jax import lax
from jax.experimental import pallas as pl
from jax.experimental.pallas import tpu as pltpu

_LANE = 128
_SUBLANE = 8


def _focal_loss_kernel(x_ref, t_ref, out_ref, *, alpha, gamma, n_valid,
                       tile_elems, has_pad):
    i = pl.program_id(0)

    # Cast native storage dtypes (f32/bf16/int) to f32 compute on the VPU.
    x = x_ref[...].astype(jnp.float32)
    t = t_ref[...].astype(jnp.float32)

    # Shared transcendental: z = exp(-|x|) feeds both the numerically stable
    # binary_cross_entropy_with_logits and the sigmoid.
    z = jnp.exp(-jnp.abs(x))
    ce = jnp.maximum(x, 0.0) - x * t + jnp.log1p(z)
    # sigmoid(x) = where(x >= 0, 1, z) / (1 + z)   (exact divide; matches reference)
    p = jnp.where(x >= 0.0, 1.0, z) / (1.0 + z)

    p_t = p * t + (1.0 - p) * (1.0 - t)
    one_minus_pt = 1.0 - p_t
    if float(gamma).is_integer():
        # Exact repeated multiplication; avoids exp(g*log(0)) = nan at p_t == 1.
        focal = lax.integer_pow(one_minus_pt, int(gamma))
    else:
        focal = jnp.power(one_minus_pt, jnp.float32(gamma))

    loss = ce * focal
    if alpha >= 0:
        alpha_t = alpha * t + (1.0 - alpha) * (1.0 - t)
        loss = alpha_t * loss

    rows, lanes = loss.shape  # (row_tile, 128), row_tile % 8 == 0

    def write_partial(l):
        # (row_tile, 128) -> (8, 128) partial sum with pure vreg-wise VALU adds.
        out_ref[...] = l.reshape(rows // _SUBLANE, _SUBLANE, lanes).sum(axis=0)

    if has_pad:
        last = pl.num_programs(0) - 1

        @pl.when(i < last)
        def _():
            write_partial(loss)

        @pl.when(i == last)
        def _():
            # Only the last tile contains padding; mask by global element index.
            base = i * tile_elems
            gidx = (base
                    + lax.broadcasted_iota(jnp.int32, loss.shape, 0) * lanes
                    + lax.broadcasted_iota(jnp.int32, loss.shape, 1))
            write_partial(jnp.where(gidx < n_valid, loss, 0.0))
    else:
        write_partial(loss)


def focal_loss_sum(inputs, targets, alpha=0.9, gamma=10, row_tile=1024):
    """Pallas TPU implementation of sigmoid focal loss with reduction='sum'."""
    assert inputs.shape == targets.shape
    n = int(inputs.size)

    # Lane-dense 2-D slab (rows, 128); process `row_tile` rows per grid step.
    rows = pl.cdiv(n, _LANE)
    row_tile = max(_SUBLANE, (int(row_tile) // _SUBLANE) * _SUBLANE)
    row_tile = min(row_tile, pl.cdiv(rows, _SUBLANE) * _SUBLANE)
    grid0 = pl.cdiv(rows, row_tile)
    rows_padded = grid0 * row_tile
    padded = rows_padded * _LANE
    pad = padded - n

    x = inputs.reshape(-1)   # native dtype, no astype copy
    t = targets.reshape(-1)
    if pad:
        # Only when n is not a multiple of the tile size; padded values are
        # irrelevant because the kernel masks them by index on the last step.
        x = jnp.pad(x, (0, pad))
        t = jnp.pad(t, (0, pad))
    x2 = x.reshape(rows_padded, _LANE)
    t2 = t.reshape(rows_padded, _LANE)

    kernel = functools.partial(
        _focal_loss_kernel,
        alpha=float(alpha),
        gamma=gamma,
        n_valid=n,
        tile_elems=row_tile * _LANE,
        has_pad=(pad > 0),
    )

    partials = pl.pallas_call(
        kernel,
        out_shape=jax.ShapeDtypeStruct((grid0 * _SUBLANE, _LANE), jnp.float32),
        grid_spec=pltpu.PrefetchScalarGridSpec(
            num_scalar_prefetch=0,
            grid=(grid0,),
            in_specs=[
                pl.BlockSpec((row_tile, _LANE), lambda i: (i, 0)),
                pl.BlockSpec((row_tile, _LANE), lambda i: (i, 0)),
            ],
            out_specs=pl.BlockSpec((_SUBLANE, _LANE), lambda i: (i, 0)),
        ),
        compiler_params=pltpu.CompilerParams(
            # Every grid step owns its own output block -> safe to shard the grid
            # across TensorCores (uses both TCs on v7x; no effect on v5e/v6e).
            dimension_semantics=("parallel",),
        ),
    )(x2, t2)

    # Tiny deterministic reduce of the per-tile (8,128) partial sums.
    return jnp.sum(partials)


def _focal_loss_ref(inputs, targets, alpha=0.9, gamma=10):
    """Pure-JAX reference mirroring the PyTorch sigmoid-focal-loss semantics."""
    x = inputs.astype(jnp.float32)
    t = targets.astype(jnp.float32)
    p = jax.nn.sigmoid(x)
    ce = jnp.maximum(x, 0.0) - x * t + jnp.log1p(jnp.exp(-jnp.abs(x)))
    p_t = p * t + (1.0 - p) * (1.0 - t)
    loss = ce * (1.0 - p_t) ** gamma
    if alpha >= 0:
        alpha_t = alpha * t + (1.0 - alpha) * (1.0 - t)
        loss = alpha_t * loss
    return jnp.sum(loss)


if __name__ == "__main__":
    key = jax.random.PRNGKey(0)
    k1, k2, k3, k4 = jax.random.split(key, 4)

    # Case 1: small NCHW logit map; element count is tile-aligned (no padding path).
    B, C, H, W = 2, 4, 16, 16
    logits = jax.random.normal(k1, (B, C, H, W), dtype=jnp.float32) * 2.0
    targets = (jax.random.uniform(k2, (B, C, H, W)) > 0.5).astype(jnp.float32)

    out = jax.block_until_ready(focal_loss_sum(logits, targets, alpha=0.9, gamma=10))
    ref = jax.block_until_ready(_focal_loss_ref(logits, targets, alpha=0.9, gamma=10))
    assert jnp.allclose(out, ref, rtol=1e-4, atol=1e-3), (out, ref)

    # Case 2: ragged size + multi-step grid (exercises the in-kernel tail mask and
    # the parallel per-tile partial-sum path).
    shape2 = (2, 3, 37, 53)
    logits2 = jax.random.normal(k3, shape2, dtype=jnp.float32) * 2.0
    targets2 = (jax.random.uniform(k4, shape2) > 0.5).astype(jnp.float32)

    out2 = jax.block_until_ready(
        focal_loss_sum(logits2, targets2, alpha=0.9, gamma=10, row_tile=16))
    ref2 = jax.block_until_ready(_focal_loss_ref(logits2, targets2, alpha=0.9, gamma=10))
    assert jnp.allclose(out2, ref2, rtol=1e-4, atol=1e-3), (out2, ref2)

    print("KERNEL_OK")
</pallas_src>

<mosaic_0001>
module attributes {stable_mosaic.version = 11 : i64} {
  func.func @_focal_loss_kernel(%arg0: i32, %arg1: memref<16x128xf32, #tpu.memory_space<vmem>>, %arg2: memref<16x128xf32, #tpu.memory_space<vmem>>, %arg3: memref<8x128xf32, #tpu.memory_space<vmem>>) attributes {dimension_semantics = [#tpu.dimension_semantics<parallel>], iteration_bounds = array<i64: 1>, scalar_prefetch = 0 : i64, scratch_operands = 0 : i64, tpu.core_type = #tpu.core_type<tc>, window_params = [{transform_indices = @transform_0, window_bounds = array<i64: 16, 128>}, {transform_indices = @transform_1, window_bounds = array<i64: 16, 128>}, {transform_indices = @transform_2, window_bounds = array<i64: 8, 128>}]} {
    %c0 = arith.constant 0 : index
    %c0_0 = arith.constant 0 : index
    %0 = vector.load %arg1[%c0, %c0_0] : memref<16x128xf32, #tpu.memory_space<vmem>>, vector<16x128xf32>
    %c0_1 = arith.constant 0 : index
    %c0_2 = arith.constant 0 : index
    %1 = vector.load %arg2[%c0_1, %c0_2] : memref<16x128xf32, #tpu.memory_space<vmem>>, vector<16x128xf32>
    %2 = math.absf %0 : vector<16x128xf32>
    %cst = arith.constant 0.000000e+00 : f32
    %3 = vector.broadcast %cst : f32 to vector<16x128xf32>
    %4 = arith.subf %3, %2 : vector<16x128xf32>
    %5 = math.exp %4 : vector<16x128xf32>
    %cst_3 = arith.constant 0.000000e+00 : f32
    %6 = vector.broadcast %cst_3 : f32 to vector<16x128xf32>
    %7 = arith.maximumf %0, %6 : vector<16x128xf32>
    %8 = arith.mulf %0, %1 : vector<16x128xf32>
    %9 = arith.subf %7, %8 : vector<16x128xf32>
    %10 = math.log1p %5 : vector<16x128xf32>
    %11 = arith.addf %9, %10 : vector<16x128xf32>
    %cst_4 = arith.constant 0.000000e+00 : f32
    %12 = vector.broadcast %cst_4 : f32 to vector<16x128xf32>
    %13 = arith.cmpf oge, %0, %12 : vector<16x128xf32>
    %cst_5 = arith.constant 1.000000e+00 : f32
    %14 = vector.broadcast %cst_5 : f32 to vector<16x128xf32>
    %15 = arith.select %13, %14, %5 : vector<16x128xi1>, vector<16x128xf32>
    %cst_6 = arith.constant 1.000000e+00 : f32
    %16 = vector.broadcast %cst_6 : f32 to vector<16x128xf32>
    %17 = arith.addf %16, %5 : vector<16x128xf32>
    %18 = arith.divf %15, %17 : vector<16x128xf32>
    %19 = arith.mulf %18, %1 : vector<16x128xf32>
    %cst_7 = arith.constant 1.000000e+00 : f32
    %20 = vector.broadcast %cst_7 : f32 to vector<16x128xf32>
    %21 = arith.subf %20, %18 : vector<16x128xf32>
    %cst_8 = arith.constant 1.000000e+00 : f32
    %22 = vector.broadcast %cst_8 : f32 to vector<16x128xf32>
    %23 = arith.subf %22, %1 : vector<16x128xf32>
    %24 = arith.mulf %21, %23 : vector<16x128xf32>
    %25 = arith.addf %19, %24 : vector<16x128xf32>
    %cst_9 = arith.constant 1.000000e+00 : f32
    %26 = vector.broadcast %cst_9 : f32 to vector<16x128xf32>
    %27 = arith.subf %26, %25 : vector<16x128xf32>
    %28 = arith.mulf %27, %27 : vector<16x128xf32>
    %29 = arith.mulf %28, %28 : vector<16x128xf32>
    %30 = arith.mulf %29, %29 : vector<16x128xf32>
    %31 = arith.mulf %28, %30 : vector<16x128xf32>
    %32 = arith.mulf %11, %31 : vector<16x128xf32>
    %cst_10 = arith.constant 0.899999976 : f32
    %33 = vector.broadcast %cst_10 : f32 to vector<16x128xf32>
    %34 = arith.mulf %33, %1 : vector<16x128xf32>
    %cst_11 = arith.constant 1.000000e+00 : f32
    %35 = vector.broadcast %cst_11 : f32 to vector<16x128xf32>
    %36 = arith.subf %35, %1 : vector<16x128xf32>
    %cst_12 = arith.constant 1.000000e-01 : f32
    %37 = vector.broadcast %cst_12 : f32 to vector<16x128xf32>
    %38 = arith.mulf %37, %36 : vector<16x128xf32>
    %39 = arith.addf %34, %38 : vector<16x128xf32>
    %40 = arith.mulf %39, %32 : vector<16x128xf32>
    %41 = vector.shape_cast %40 : vector<16x128xf32> to vector<2x8x128xf32>
    %cst_13 = arith.constant dense<0.000000e+00> : vector<8x128xf32>
    %42 = vector.multi_reduction <add>, %41, %cst_13 [0] : vector<2x8x128xf32> to vector<8x128xf32>
    %c0_14 = arith.constant 0 : index
    %c0_15 = arith.constant 0 : index
    %43 = vector.load %arg3[%c0_14, %c0_15] : memref<8x128xf32, #tpu.memory_space<vmem>>, vector<8x128xf32>
    tpu.vector_store %arg3[%c0_14, %c0_15], %42 {strides = array<i32>} : memref<8x128xf32, #tpu.memory_space<vmem>>, vector<8x128xf32>,
    return
  }
  func.func @transform_0(%arg0: i32) -> (i32, i32) {
    %c0_i32 = arith.constant 0 : i32
    %c0_i32_0 = arith.constant 0 : i32
    return %arg0, %c0_i32 : i32, i32
  }
  func.func @transform_1(%arg0: i32) -> (i32, i32) {
    %c0_i32 = arith.constant 0 : i32
    %c0_i32_0 = arith.constant 0 : i32
    return %arg0, %c0_i32 : i32, i32
  }
  func.func @transform_2(%arg0: i32) -> (i32, i32) {
    %c0_i32 = arith.constant 0 : i32
    %c0_i32_0 = arith.constant 0 : i32
    return %arg0, %c0_i32 : i32, i32
  }
}

</mosaic_0001>

<bundles_post_ra>
// kernel: tpu_custom_call.1
= control target key start
LH: loop header
LB: loop body
LE: loop exit
PB: predicated region body
PF: predicated region fallthrough
CT: control target
= control target key end

     0   :  { %7 = vsyncpa [#allocation3], 0  ;;  %s293_s0 = inlined_call_operand.hbm [shape: f32[16,128], index: 0, kind: input, shape index: {}]   ;;  %s294_s1 = inlined_call_operand.hbm [shape: f32[16,128], index: 1, kind: input, shape index: {}]   ;;  %s295_s2 = inlined_call_operand.hbm [shape: f32[8,128], index: 2, kind: output, shape index: {}]  }
   0x1   :  { %8 = vsyncpa [#allocation6], 0 }
   0x2   :  { %9 = vsyncpa [#allocation4], 0  ;;  %s225_s9 = smov [#allocation2]   ;;  %s153_s13 = scalar_lea.hbm %s293_s0, 256 }
   0x3   :  { %s15_s10 = sshll.u32 %s225_s9, 4  ;;  %p154_p0 = scmp.ne.s32.totalorder %s293_s0, %s153_s13  ;;  %s16_s10 = int_to_ptr.vmem [resolvable:$true] %s15_s10 }
   0x4   :  { %p157_p1 = scmp.lt.u32.totalorder %s153_s13, %s293_s0 }
   0x6   :  { %p159_p2 = pnand %p157_p1, %p154_p0 }
   0x8   :  { %162 = shalt.err (!%p159_p2)
}
   0x9   :  { %s163_s18 = scalar_lea.vmem %s16_s10, 256  ;;  %p168_p4 = scmp.lt.s32.totalorder %s16_s10, %s16_s10 }
   0xa   :  { %p164_p3 = scmp.ne.s32.totalorder %s16_s10, %s163_s18  ;;  %p169_p5 = scmp.lt.s32.totalorder %s163_s18, %s163_s18 }
   0xc   :  { %p170_p6 = por %p169_p5, %p168_p4 }
   0xe   :  { %p171_p7 = pnand %p170_p6, %p164_p3 }
  0x10   :  { %174 = shalt.err (!%p171_p7)
}
  0x11   :  { %s226_s19 = smov 128   ;;  %s227_s20 = smov 8  }
  0x12   :  { %21 = dma.hbm_to_vmem [thread:$0]  %s293_s0, 256, %s16_s10, [#allocation3], %s226_s19, %s226_s19, %s227_s20  }
  0x13   :  { %s228_s23 = smov [#allocation5]   ;;  %s175_s27 = scalar_lea.hbm %s294_s1, 256 }
  0x14   :  { %s27_s24 = sshll.u32 %s228_s23, 4  ;;  %p176_p8 = scmp.ne.s32.totalorder %s294_s1, %s175_s27  ;;  %s28_s24 = int_to_ptr.vmem [resolvable:$true] %s27_s24 }
  0x15   :  { %p179_p9 = scmp.lt.u32.totalorder %s175_s27, %s294_s1 }
  0x17   :  { %p181_p10 = pnand %p179_p9, %p176_p8 }
  0x19   :  { %184 = shalt.err (!%p181_p10)
}
  0x1a   :  { %s185_s4 = scalar_lea.vmem %s28_s24, 256  ;;  %p190_p12 = scmp.lt.s32.totalorder %s28_s24, %s28_s24 }
  0x1b   :  { %p186_p11 = scmp.ne.s32.totalorder %s28_s24, %s185_s4  ;;  %p191_p13 = scmp.lt.s32.totalorder %s185_s4, %s185_s4 }
  0x1d   :  { %p192_p0 = por %p191_p13, %p190_p12 }
  0x1f   :  { %p193_p1 = pnand %p192_p0, %p186_p11 }
  0x21   :  { %196 = shalt.err (!%p193_p1)
}
  0x22   :  { %33 = dma.hbm_to_vmem [thread:$0]  %s294_s1, 256, %s28_s24, [#allocation6], %s226_s19, %s226_s19, %s227_s20  }
  0x23   :  { %219 = dma.done.wait [#allocation3], 256  }
  0x24   :  { %220 = vsyncadd [#allocation3], 4294967040 }
  0x25   :  { %221 = dma.done.wait [#allocation6], 256  }
  0x26   :  { %222 = vsyncadd [#allocation6], 4294967040  ;;  %v40_v0 = vld [vmem:[#allocation2] sm:$0xff]  ;;  %v41_v1 = vld [vmem:[#allocation2 + $0x8] sm:$0xff]  ;;  %s229_s1 = smov [#allocation7]  }
  0x27   :  { %v44_v2 = vand.u32 2147483647, %v40_v0  ;;  %v45_v3 = vand.u32 2147483647, %v41_v1  ;;  %vm78_vm0 = vcmp.ge.f32.partialorder %v40_v0, 0.0  ;;  %vm79_vm1 = vcmp.ge.f32.partialorder %v41_v1, 0.0 }
  0x28   :  { %v42_v12 = vld [vmem:[#allocation5] sm:$0xff]  ;;  %v43_v14 = vld [vmem:[#allocation5 + $0x8] sm:$0xff]  ;;  %v52_v36 = vmax.f32 %v40_v0, 0.0  ;;  %v53_v37 = vmax.f32 %v41_v1, 0.0  ;;  %s126_s6 = sshll.u32 %s229_s1, 4  ;;  %s127_s6 = int_to_ptr.vmem [resolvable:$true] %s126_s6 }
  0x29   :  { %v46_v4 = vsub.f32 0.0, %v44_v2  ;;  %v47_v5 = vsub.f32 0.0, %v45_v3  ;;  %v92_v21 = vsub.f32 1.0, %v42_v12  ;;  %v93_v23 = vsub.f32 1.0, %v43_v14  ;;  %s197_s7 = scalar_lea.vmem %s127_s6, 128  ;;  %p202_p3 = scmp.lt.s32.totalorder %s127_s6, %s127_s6 }
  0x2a   :  { %v54_v38 = vmul.f32 %v42_v12, %v40_v0  ;;  %v55_v40 = vmul.f32 %v43_v14, %v41_v1  ;;  %v110_v57 = vmul.f32 0.9, %v42_v12  ;;  %v111_v60 = vmul.f32 0.9, %v43_v14  ;;  %p198_p2 = scmp.ne.s32.totalorder %s127_s6, %s197_s7  ;;  %p203_p4 = scmp.lt.s32.totalorder %s197_s7, %s197_s7 }
  0x2b   :  { %v48_v6 = vmul.f32 1.442695, %v46_v4  ;;  %v50_v7 = vmul.f32 1.442695, %v47_v5  ;;  %v112_v58 = vmul.f32 0.1, %v92_v21 }
  0x2c   :  { %v56_v50 = vsub.f32 %v52_v36, %v54_v38  ;;  %v57_v52 = vsub.f32 %v53_v37, %v55_v40  ;;  %v113_v61 = vmul.f32 0.1, %v93_v23  ;;  %p204_p5 = por %p203_p4, %p202_p3 }
  0x2d   :  { %141 = vpow2.f32 %v48_v6  ;;  %v114_v3 = vadd.f32 %v112_v58, %v110_v57 }
  0x2e   :  { %143 = vpow2.f32 %v50_v7  ;;  %v115_v5 = vadd.f32 %v113_v61, %v111_v60  ;;  %p205_p6 = pnand %p204_p5, %p198_p2 }
  0x37   :  { %v142_v8 = vpop.eup %141 }
  0x38   :  { %v144_v9 = vpop.eup %143  ;;  %v58_v10 = vadd.f32 1.0, %v142_v8  ;;  %v80_v13 = vsel %vm78_vm0, 1.0, %v142_v8  ;;  %v61_v17 = vmul.f32 -0.5, %v142_v8  ;;  %v64_v30 = vand.u32 2147483647, %v142_v8 }
  0x39   :  { %v67_v11 = vadd.f32 1.0, %v144_v9  ;;  %v81_v15 = vsel %vm79_vm1, 1.0, %v144_v9  ;;  %v70_v19 = vmul.f32 -0.5, %v144_v9  ;;  %v73_v34 = vand.u32 2147483647, %v144_v9 }
  0x3a   :  { %145 = vrcp.f32 %v58_v10  ;;  %v62_v26 = vadd.f32 1.0, %v61_v17  ;;  %vm269_vm2 = vcmp.lt.f32.partialorder %v64_v30, 0.0004427343 }
  0x3b   :  { %147 = vrcp.f32 %v67_v11  ;;  %v71_v31 = vadd.f32 1.0, %v70_v19  ;;  %vm273_vm3 = vcmp.lt.f32.partialorder %v73_v34, 0.0004427343 }
  0x3c   :  { %149 = vlog2.f32 %v58_v10  ;;  %v63_v42 = vmul.f32 %v142_v8, %v62_v26 }
  0x3d   :  { %151 = vlog2.f32 %v67_v11  ;;  %v72_v46 = vmul.f32 %v144_v9, %v71_v31 }
  0x44   :  { %v146_v16 = vpop.eup %145 }
  0x45   :  { %v148_v18 = vpop.eup %147  ;;  %v85_v20 = vmul.f32 %v146_v16, %v80_v13 }
  0x46   :  { %v87_v22 = vmul.f32 %v148_v18, %v81_v15  ;;  %v150_v29 = vpop.eup %149 }
  0x47   :  { %v88_v24 = vmul.f32 %v85_v20, %v42_v12  ;;  %v90_v25 = vsub.f32 1.0, %v85_v20  ;;  %v152_v33 = vpop.eup %151  ;;  %v60_v41 = vmul.f32 0.6931472, %v150_v29 }
  0x48   :  { %v89_v27 = vmul.f32 %v87_v22, %v43_v14  ;;  %v91_v28 = vsub.f32 1.0, %v87_v22  ;;  %v69_v45 = vmul.f32 0.6931472, %v152_v33 }
  0x49   :  { %v94_v32 = vmul.f32 %v92_v21, %v90_v25  ;;  %v66_v53 = vsel %vm269_vm2, %v63_v42, %v60_v41 }
  0x4a   :  { %v95_v35 = vmul.f32 %v93_v23, %v91_v28  ;;  %v75_v55 = vsel %vm273_vm3, %v72_v46, %v69_v45  ;;  %v76_v62 = vadd.f32 %v66_v53, %v56_v50 }
  0x4b   :  { %v96_v39 = vadd.f32 %v94_v32, %v88_v24  ;;  %v77_v0 = vadd.f32 %v75_v55, %v57_v52 }
  0x4c   :  { %v97_v43 = vadd.f32 %v95_v35, %v89_v27 }
  0x4d   :  { %v98_v47 = vsub.f32 1.0, %v96_v39 }
  0x4e   :  { %v99_v49 = vsub.f32 1.0, %v97_v43 }
  0x4f   :  { %v100_v51 = vmul.f32 %v98_v47, %v98_v47 }
  0x50   :  { %v101_v54 = vmul.f32 %v99_v49, %v99_v49 }
  0x51   :  { %v102_v56 = vmul.f32 %v100_v51, %v100_v51 }
  0x52   :  { %v103_v59 = vmul.f32 %v101_v54, %v101_v54 }
  0x53   :  { %v104_v63 = vmul.f32 %v102_v56, %v102_v56 }
  0x54   :  { %v105_v1 = vmul.f32 %v103_v59, %v103_v59 }
  0x55   :  { %v106_v2 = vmul.f32 %v104_v63, %v100_v51 }
  0x56   :  { %v107_v4 = vmul.f32 %v105_v1, %v101_v54 }
  0x57   :  { %v108_v6 = vmul.f32 %v106_v2, %v76_v62 }
  0x58   :  { %v109_v7 = vmul.f32 %v107_v4, %v77_v0 }
  0x59   :  { %v116_v8 = vmul.f32 %v114_v3, %v108_v6 }
  0x5a   :  { %v117_v9 = vmul.f32 %v115_v5, %v109_v7 }
  0x5c   :  { %v118_v10 = vadd.f32 %v117_v9, %v116_v8 }
  0x5e   :  { %119 = vst [vmem:[#allocation7] sm:$0xff] %v118_v10 }
  0x5f   :  { %208 = shalt.err (!%p205_p6)
}
  0x60   :  { %s209_s10 = scalar_lea.hbm %s295_s2, 128 }
  0x61   :  { %p210_p7 = scmp.ne.s32.totalorder %s295_s2, %s209_s10  ;;  %p213_p8 = scmp.lt.u32.totalorder %s209_s10, %s295_s2 }
  0x63   :  { %p215_p9 = pnand %p213_p8, %p210_p7 }
  0x65   :  { %218 = shalt.err (!%p215_p9)
}
  0x66   :  { %129 = dma.vmem_to_hbm [thread:$0]  %s127_s6, 128, %s295_s2, [#allocation4]  }
  0x67   :  { %223 = dma.done.wait [#allocation4], 128  }
  0x68   :  { %224 = vsyncadd [#allocation4], 4294967168 }
  0x69   :  { %133 = vsyncpa [#allocation3], 1 }
  0x6a   :  { %134 = vsyncpa [#allocation6], 1 }
  0x6b   :  { %135 = vsyncpa [#allocation4], 1 }

</bundles_post_ra>
